<compile_context>
chip_gen: v6e
topology: v6e:2x2x1
jax: 0.10.0
libtpu: 0.0.40
codegen_flags: <defaults>
</compile_context>

<pallas_src>
import jax
import jax.numpy as jnp
from jax.experimental import pallas as pl
from jax.experimental.pallas import tpu as pltpu

n_embedding_dims = 32


def bigram_fused_kernel(ids_ref, pos_ref, table_ref, out_ref):
    # ids_ref   : (tm, 1)     int32  token ids (values in [0, V))
    # pos_ref   : (tm, 1)     int32  position indices pre-offset by V -> [V, V+T)
    # table_ref : (V + T, V)  f32    combined [tok_table@W^T + b ; pos_table@W^T]
    # out_ref   : (tm, V)     f32    logits for this row tile
    ids = ids_ref[...]                                   # (tm, 1)
    pos = pos_ref[...]                                   # (tm, 1)
    tm = out_ref.shape[0]
    k = table_ref.shape[0]                               # V + T

    col = jax.lax.broadcasted_iota(jnp.int32, (tm, k), 1)
    # Two ones per row: one at the token id, one at V + position.
    onehot = jnp.logical_or(col == ids, col == pos).astype(jnp.float32)

    # Single lane-dense MXU matmul: gather + position add + bias in one op.
    out_ref[...] = jnp.dot(onehot, table_ref[...],
                           preferred_element_type=jnp.float32)


def bigram_forward(inputs, tok_table, pos_table, lm_w, lm_b, *, block_rows=256):
    """inputs: (B, T) int32 token ids. Returns (logits (B,T,V) f32, loss=None)."""
    B, T = inputs.shape
    V, E = tok_table.shape
    rows = B * T

    # ---- One-time precompute (outside the kernel). In a real model this is
    # done once at load time, not per forward call. ----
    w_t = lm_w.T                                                        # (E, V)
    fused_tok = jnp.dot(tok_table, w_t,
                        precision=jax.lax.Precision.HIGHEST) + lm_b[None, :]   # (V, V)
    pos_logits = jnp.dot(pos_table[:T], w_t,
                         precision=jax.lax.Precision.HIGHEST)                  # (T, V)
    combined = jnp.concatenate([fused_tok, pos_logits], axis=0)                # (V+T, V)

    # Flat, lane-dense layout for the kernel: (rows, 1) ids / (rows, V) output.
    ids_flat = inputs.reshape(rows, 1).astype(jnp.int32)
    pos_flat = (jnp.arange(rows, dtype=jnp.int32) % T + V).reshape(rows, 1)

    # Row tile: as large as sensible; must be the full extent or a multiple of 8.
    tm = min(block_rows, rows)
    if tm != rows and tm % 8 != 0:
        tm = rows
    grid = (pl.cdiv(rows, tm),)

    flat_logits = pl.pallas_call(
        bigram_fused_kernel,
        out_shape=jax.ShapeDtypeStruct((rows, V), jnp.float32),
        grid=grid,
        in_specs=[
            pl.BlockSpec((tm, 1), lambda i: (i, 0)),        # token ids (tiled rows)
            pl.BlockSpec((tm, 1), lambda i: (i, 0)),        # position ids (tiled rows)
            pl.BlockSpec((V + T, V), lambda i: (0, 0)),     # combined table, VMEM-resident
        ],
        out_specs=pl.BlockSpec((tm, V), lambda i: (i, 0)),  # lane-dense flat logits
        compiler_params=pltpu.CompilerParams(
            dimension_semantics=("parallel",)),             # megacore on v7x
    )(ids_flat, pos_flat, combined)

    logits = flat_logits.reshape(B, T, V)

    # TODO(synk): cross-entropy loss path (targets is not None) not implemented;
    # the reference module returns loss=None when targets are absent.
    return logits, None


if __name__ == "__main__":
    # Small shapes consistent with the module's forward.
    B, T = 2, 8
    vocab_size = 128
    context_length = 8
    E = n_embedding_dims

    key = jax.random.PRNGKey(0)
    k_tok, k_pos, k_w, k_b, k_ids = jax.random.split(key, 5)

    # Deterministic synthetic parameters (nn.Embedding ~ N(0,1); Linear ~ small).
    tok_table = jax.random.normal(k_tok, (vocab_size, E), dtype=jnp.float32)
    pos_table = jax.random.normal(k_pos, (context_length, E), dtype=jnp.float32)
    lm_w = (jax.random.normal(k_w, (vocab_size, E), dtype=jnp.float32)
            * (1.0 / jnp.sqrt(E)))
    lm_b = jax.random.normal(k_b, (vocab_size,), dtype=jnp.float32) * 0.01

    inputs = jax.random.randint(k_ids, (B, T), 0, vocab_size, dtype=jnp.int32)

    # block_rows=8 so the 16 flattened rows exercise a 2-step row grid.
    logits, loss = bigram_forward(inputs, tok_table, pos_table, lm_w, lm_b,
                                  block_rows=8)
    logits = jax.block_until_ready(logits)

    # Pure-JAX reference (same math as the PyTorch module with targets=None).
    ref = jnp.dot(tok_table[inputs] + pos_table[:T][None, :, :], lm_w.T,
                  precision=jax.lax.Precision.HIGHEST) + lm_b
    assert logits.shape == (B, T, vocab_size)
    assert loss is None
    assert jnp.allclose(logits, ref, atol=1e-3, rtol=1e-3)

    print("KERNEL_OK")
</pallas_src>

<mosaic_0001>
module attributes {stable_mosaic.version = 11 : i64} {
  func.func @bigram_fused_kernel(%arg0: i32, %arg1: memref<8x1xi32, #tpu.memory_space<vmem>>, %arg2: memref<8x1xi32, #tpu.memory_space<vmem>>, %arg3: memref<136x128xf32, #tpu.memory_space<vmem>>, %arg4: memref<8x128xf32, #tpu.memory_space<vmem>>) attributes {dimension_semantics = [#tpu.dimension_semantics<parallel>], iteration_bounds = array<i64: 2>, scalar_prefetch = 0 : i64, scratch_operands = 0 : i64, tpu.core_type = #tpu.core_type<tc>, window_params = [{transform_indices = @transform_0, window_bounds = array<i64: 8, 1>}, {transform_indices = @transform_1, window_bounds = array<i64: 8, 1>}, {pipeline_mode = #tpu.pipeline_mode<synchronous>, transform_indices = @transform_2, window_bounds = array<i64: 136, 128>}, {transform_indices = @transform_3, window_bounds = array<i64: 8, 128>}]} {
    %c0 = arith.constant 0 : index
    %c0_0 = arith.constant 0 : index
    %0 = vector.load %arg1[%c0, %c0_0] : memref<8x1xi32, #tpu.memory_space<vmem>>, vector<8x1xi32>
    %c0_1 = arith.constant 0 : index
    %c0_2 = arith.constant 0 : index
    %1 = vector.load %arg2[%c0_1, %c0_2] : memref<8x1xi32, #tpu.memory_space<vmem>>, vector<8x1xi32>
    %2 = tpu.iota {dimensions = array<i32: 1>} : vector<8x136xi32>
    %3 = vector.broadcast %0 : vector<8x1xi32> to vector<8x136xi32>
    %4 = arith.cmpi eq, %2, %3 : vector<8x136xi32>
    %5 = vector.broadcast %1 : vector<8x1xi32> to vector<8x136xi32>
    %6 = arith.cmpi eq, %2, %5 : vector<8x136xi32>
    %7 = arith.ori %4, %6 : vector<8x136xi1>
    %8 = arith.extui %7 : vector<8x136xi1> to vector<8x136xi32>
    %9 = arith.sitofp %8 : vector<8x136xi32> to vector<8x136xf32>
    %c0_3 = arith.constant 0 : index
    %c0_4 = arith.constant 0 : index
    %10 = vector.load %arg3[%c0_3, %c0_4] : memref<136x128xf32, #tpu.memory_space<vmem>>, vector<136x128xf32>
    %cst = arith.constant dense<0.000000e+00> : vector<8x128xf32>
    %11 = tpu.matmul %9, %10, %cst {dimension_numbers = #tpu.dot_dimension_numbers<[1], [0], [0], [1], [0, 0, 1, 1], [], []>} : vector<8x136xf32>, vector<136x128xf32>, vector<8x128xf32> -> vector<8x128xf32>
    %c0_5 = arith.constant 0 : index
    %c0_6 = arith.constant 0 : index
    %12 = vector.load %arg4[%c0_5, %c0_6] : memref<8x128xf32, #tpu.memory_space<vmem>>, vector<8x128xf32>
    tpu.vector_store %arg4[%c0_5, %c0_6], %11 {strides = array<i32>} : memref<8x128xf32, #tpu.memory_space<vmem>>, vector<8x128xf32>,
    return
  }
  func.func @transform_0(%arg0: i32) -> (i32, i32) {
    %c0_i32 = arith.constant 0 : i32
    %c0_i32_0 = arith.constant 0 : i32
    return %arg0, %c0_i32 : i32, i32
  }
  func.func @transform_1(%arg0: i32) -> (i32, i32) {
    %c0_i32 = arith.constant 0 : i32
    %c0_i32_0 = arith.constant 0 : i32
    return %arg0, %c0_i32 : i32, i32
  }
  func.func @transform_2(%arg0: i32) -> (i32, i32) {
    %c0_i32 = arith.constant 0 : i32
    %c0_i32_0 = arith.constant 0 : i32
    %c0_i32_1 = arith.constant 0 : i32
    return %c0_i32, %c0_i32_0 : i32, i32
  }
  func.func @transform_3(%arg0: i32) -> (i32, i32) {
    %c0_i32 = arith.constant 0 : i32
    %c0_i32_0 = arith.constant 0 : i32
    return %arg0, %c0_i32 : i32, i32
  }
}

</mosaic_0001>

<bundles_post_ra>
// kernel: tpu_custom_call.1
= control target key start
LH: loop header
LB: loop body
LE: loop exit
PB: predicated region body
PF: predicated region fallthrough
CT: control target
= control target key end

     0   :  { %8 = vsyncpa [#allocation3], 0  ;;  %s738_s0 = inlined_call_operand.vmem [shape: s32[16,1], index: 0, kind: input, shape index: {}]   ;;  %s739_s1 = inlined_call_operand.vmem [shape: s32[16,1], index: 1, kind: input, shape index: {}]   ;;  %s740_s2 = inlined_call_operand.hbm [shape: f32[136,128], index: 2, kind: input, shape index: {}]   ;;  %s741_s3 = inlined_call_operand.hbm [shape: f32[16,128], index: 3, kind: output, shape index: {}]  }
   0x1   :  { %9 = vsyncpa [#allocation4], 0 }
   0x2   :  { %11 = vsyncpa [#allocation4 + $0x1], 0  ;;  %s600_s12 = smov 0   ;;  %s602_s13 = smov 0  }
   0x3   :  { %s604_s14 = smov 0   ;;  %s606_s15 = smov 0  }
   0x4 LB: > { %s621_s16 = sadd.s32 4294967295, %s571_s15   ;;  %s408_s17 = sadd.s32 4294967294, %s571_s15   ;;  %s571_s15 = sphi %s606_s15, %s749_s15   ;;  %s567_s14 = sphi %s604_s14, %s748_s14   ;;  %s563_s13 = sphi %s602_s13, %s747_s13   ;;  %s559_s12 = sphi %s600_s12, %s746_s12  }
   0x5   : > { %s625_s18 = sadd.s32 1, %s571_s15   ;;  %s97_s19 = sadd.s32 1, %s567_s14 }
   0x6   : > { %s94_s20 = ssub.s32 %s571_s15, %s625_s18  ;;  %p107_p0 = scmp.ne.s32.totalorder %s567_s14, %s563_s13 }
   0x7   : > { %p95_p1 = scmp.eq.s32.totalorder %s94_s20, 0  ;;  %p108_p2 = scmp.eq.s32.totalorder %s621_s16, 1 }
   0x8   : > { %p113_p3 = scmp.ne.s32.totalorder %s563_s13, %s559_s12  ;;  %p114_p4 = scmp.eq.s32.totalorder %s408_s17, 1 }
   0x9   : > { %s636_s21 = scalar_select %p95_p1, %s567_s14, %s97_s19  }
   0xa   : > { %p638_p5 = por %p108_p2, %p107_p0  ;;  %p642_p6 = por %p114_p4, %p113_p3 }
   0xb   : > { %p409_p7 = scmp.ge.s32.totalorder %s571_s15, 1  ;;  %p121_p8 = scmp.lt.s32.totalorder %s571_s15, 3 }
   0xc   : > { %s743_s23 = scalar_select %p642_p6, 1, 0 }
   0xd   : > { %p439_p9 = scmp.eq.s32.totalorder %s621_s16, 0  ;;  %p649_p10 = pnand %p409_p7, %p121_p8 }
   0xe   : > { %s573_s25 = smov [#allocation2]  }
   0xf   : > { %s133_s26 = sshll.u32 %s573_s25, 4  ;;  %p431_p11 = pneg %p649_p10  ;;  %s134_s26 = int_to_ptr.vmem [resolvable:$true] %s133_s26 }
  0x10   : > { %s492_s27 = scalar_lea.vmem %s134_s26, 2176  ;;  %p500_p3 = scmp.lt.s32.totalorder %s134_s26, %s134_s26 }
  0x11   : > { %p432_p12 = pnand %p439_p9, %p431_p11  ;;  %p493_p0 = scmp.ne.s32.totalorder %s134_s26, %s492_s27 }
  0x12   : > { %p501_p4 = scmp.lt.s32.totalorder %s492_s27, %s492_s27 }
  0x13   : > { %p483_p13 = pneg %p432_p12 }
  0x14   : > { %p502_p6 = por %p501_p4, %p500_p3 }
  0x15   : > { %p495_p1 = pnand %p493_p0, %p483_p13 }
  0x17   : > { %p496_p2 = pneg %p495_p1 }
  0x19   : > { %p503_p7 = pnand %p502_p6, %p496_p2 }
  0x1b   : > { %506 = shalt.err (!%p503_p7)
}
  0x1c   : > { %s574_s28 = smov 128   ;;  %s575_s29 = smov 8  }
  0x1d   : > { %434 = dma.hbm_to_vmem [thread:$0]  (!%p432_p12), %s740_s2, 2176, %s134_s26, [#allocation3], %s574_s28, %s574_s28, %s575_s29  }
  0x1e   : > { %163 = sbr.rel (%p649_p10) target bundleno = 382 (0x17e), region = 32 }
  0x23   : > { %550 = dma.done.wait (%p439_p9), [#allocation3], 2176  }
  0x24   : > { %552 = vsyncadd (%p439_p9), [#allocation3], 4294965120  ;;  %p190_p8 = scmp.lt.s32.totalorder %s621_s16, 1  ;;  %v576_v0 = vmov 0   ;;  %v577_v1 = vmov 0.0   ;;  %v234_v3 = vld [vmem:[#allocation2 + $0x78] sm:$0xff]  ;;  %v200_v21 = vlaneseq }
  0x25   : > { %480 = vset.pattern.permute.xlu0 %v576_v0  ;;  %240 = vmatprep.subr.mxu0 %v577_v1  ;;  %v233_v4 = vld [vmem:[#allocation2 + $0x70] sm:$0xff]  ;;  %v232_v6 = vld [vmem:[#allocation2 + $0x68] sm:$0xff]  ;;  %v231_v7 = vld [vmem:[#allocation2 + $0x60] sm:$0xff]  ;;  %vm236_vm3 = vcmask 64512   ;;  %v578_v27 = vmov 1.0   ;;  %s187_s19 = sand.u32 1, %s563_s13  }
  0x26   : > { %s191_s5 = scalar_select %p190_p8, %s621_s16, 1  ;;  %241 = vmatpush1.msra.mxu0 %v234_v3  ;;  %v230_v8 = vld [vmem:[#allocation2 + $0x58] sm:$0xff]  ;;  %v229_v9 = vld [vmem:[#allocation2 + $0x50] sm:$0xff]  ;;  %v228_v10 = vld [vmem:[#allocation2 + $0x48] sm:$0xff]  ;;  %v201_v22 = vand.u32 127, %v200_v21 }
  0x27   : > { %242 = vmatprep.subr.mxu0 %v577_v1  ;;  %v227_v11 = vld [vmem:[#allocation2 + $0x40] sm:$0xff]  ;;  %v226_v12 = vld [vmem:[#allocation2 + $0x38] sm:$0xff]  ;;  %v225_v13 = vld [vmem:[#allocation2 + $0x30] sm:$0xff]  ;;  %s414_s20 = sshll.u32 %s187_s19, 3  ;;  %s422_s26 = sshll.u32 %s621_s16, 7 }
  0x28   : > { %s415_s6 = sshll.u32 %s191_s5, 3  ;;  %243 = vmatpush1.msra.mxu0 %v233_v4  ;;  %v224_v14 = vld [vmem:[#allocation2 + $0x28] sm:$0xff]  ;;  %v223_v15 = vld [vmem:[#allocation2 + $0x20] sm:$0xff]  ;;  %v222_v16 = vld [vmem:[#allocation2 + $0x18] sm:$0xff]  ;;  %v202_v24 = vadd.s32 128, %v201_v22  ;;  %s189_s24 = scalar_lea.vmem [#allocation5], %s414_s20 }
  0x29   : > { %s193_s9 = scalar_lea.vmem %s738_s0, %s415_s6  ;;  %s197_s17 = scalar_lea.vmem %s739_s1, %s415_s6  ;;  %244 = vmatprep.subr.mxu0 %v577_v1  ;;  %v221_v17 = vld [vmem:[#allocation2 + $0x10] sm:$0xff]  ;;  %v220_v18 = vld [vmem:[#allocation2 + $0x8] sm:$0xff]  ;;  %v219_v19 = vld [vmem:[#allocation2] sm:$0xff] }
  0x2a   : > { %v198_v2 = vld [vmem:[%s193_s9] sm:$0xff]  ;;  %245 = vmatpush1.msra.mxu0 %v232_v6  ;;  %s325_s25 = sshll.u32 %s189_s24, 4  ;;  %s699_s29 = scalar_lea.hbm %s741_s3, %s422_s26  ;;  %s694_s25 = int_to_ptr.vmem [resolvable:$true] %s325_s25 }
  0x2b   : > { %204 = vperm.xlu0 %480, %v198_v2   ;;  %v199_v5 = vld [vmem:[%s197_s17] sm:$0xff]  ;;  %246 = vmatprep.subr.mxu0 %v577_v1  ;;  %s312_s30 = scalar_lea.sflag [#allocation4], %s187_s19  ;;  %s507_s4 = scalar_lea.vmem %s694_s25, 128 }
  0x2c   : > { %247 = vmatpush1.msra.mxu0 %v231_v7  ;;  %v235_v20 = vld [vmem:[#allocation2 + $0x80] sm:$0xff]  ;;  %p508_p6 = scmp.ne.s32.totalorder %s694_s25, %s507_s4  ;;  %s579_s16 = smov [#allocation5]  }
  0x2d   : > { %248 = vmatprep.subr.mxu0 %v577_v1  ;;  %s511_s5 = sshll.u32 %s579_s16, 4  ;;  %s512_s5 = int_to_ptr.vmem [resolvable:$false] %s511_s5 }
  0x2e   : > { %249 = vmatpush1.msra.mxu0 %v230_v8  ;;  %p509_p9 = pnand %p508_p6, %p638_p5  ;;  %s513_s6 = scalar_lea.vmem %s512_s5, 256 }
  0x2f   : > { %209 = vperm.xlu0 %480, %v199_v5   ;;  %250 = vmatprep.subr.mxu0 %v577_v1  ;;  %p514_p11 = scmp.lt.s32.totalorder %s694_s25, %s512_s5  ;;  %p515_p12 = scmp.lt.s32.totalorder %s513_s6, %s507_s4 }
  0x30   : > { %251 = vmatpush1.msra.mxu0 %v229_v9  ;;  %p510_p10 = pneg %p509_p9 }
  0x31   : > { %252 = vmatprep.subr.mxu0 %v577_v1  ;;  %p516_p13 = por %p515_p12, %p514_p11 }
  0x32   : > { %253 = vmatpush1.msra.mxu0 %v228_v10 }
  0x33   : > { %254 = vmatprep.subr.mxu0 %v577_v1  ;;  %p517_p0 = pnand %p516_p13, %p510_p10 }
  0x34   : > { %255 = vmatpush1.msra.mxu0 %v227_v11 }
  0x35   : > { %256 = vmatprep.subr.mxu0 %v577_v1 }
  0x36   : > { %257 = vmatpush1.msra.mxu0 %v226_v12 }
  0x37   : > { %258 = vmatprep.subr.mxu0 %v577_v1 }
  0x38   : > { %259 = vmatpush1.msra.mxu0 %v225_v13 }
  0x39   : > { %260 = vmatprep.subr.mxu0 %v577_v1 }
  0x3a   : > { %261 = vmatpush1.msra.mxu0 %v224_v14 }
  0x3b   : > { %262 = vmatprep.subr.mxu0 %v577_v1 }
  0x3c   : > { %263 = vmatpush1.msra.mxu0 %v223_v15 }
  0x3d   : > { %264 = vmatprep.subr.mxu0 %v577_v1 }
  0x3e   : > { %265 = vmatpush1.msra.mxu0 %v222_v16 }
  0x3f   : > { %266 = vmatprep.subr.mxu0 %v577_v1 }
  0x40   : > { %267 = vmatpush1.msra.mxu0 %v221_v17 }
  0x41   : > { %268 = vmatprep.subr.mxu0 %v577_v1 }
  0x42   : > { %269 = vmatpush1.msra.mxu0 %v220_v18 }
  0x43   : > { %270 = vmatprep.subr.mxu0 %v577_v1 }
  0x44   : > { %271 = vmatpush1.msra.mxu0 %v219_v19 }
  0x45   : > { %302 = vmatprep.subr.mxu0 %v577_v1 }
  0x46   : > { %303 = vmatpush2.msra.mxu0 %v235_v20 }
  0xa6   : > { %v205_v23 = vpop.permute.xlu0 %204 }
  0xa7   : > { %vm207_vm1 = vcmp.eq.s32.totalorder %v202_v24, %v205_v23  ;;  %vm206_vm5 = vcmp.eq.s32.totalorder %v201_v22, %v205_v23 }
  0xaa   : > { %v210_v25 = vpop.permute.xlu0 %209 }
  0xab   : > { %vm212_vm0 = vcmp.eq.s32.totalorder %v202_v24, %v210_v25  ;;  %vm211_vm2 = vcmp.eq.s32.totalorder %v201_v22, %v210_v25 }
  0xac   : > { %vm214_vm4 = vmor %vm207_vm1, %vm212_vm0 }
  0xad   : > { %v418_v26 = vsel %vm214_vm4, 1.0, %v577_v1  ;;  %vm213_vm6 = vmor %vm206_vm5, %vm211_vm2 }
  0xae   : > { %419 = vmatprep.mubr.msk.f32.mxu0 %vm236_vm3, %v418_v26 }
  0xaf   : > { %420 = vmatmul.mubr.msk.f32.vlgmr.msra.gmra.mxu0 %vm213_vm6, %v578_v27 }
 0x16f   : > { %v306_v28 = vpop.f32.mrf.mxu0 }
 0x170   : > { %310 = vst [vmem:[%s189_s24] sm:$0xff] %v306_v28 }
 0x171   : > { %v308_v29 = vpop.f32.mrf.mxu0 }
 0x172   : > { %520 = shalt.err (!%p517_p0)
}
 0x173   : > { %s521_s7 = scalar_lea.hbm %s699_s29, 128  ;;  %s525_s10 = scalar_lea.hbm %s741_s3, 256 }
 0x174   : > { %p522_p1 = scmp.ne.s32.totalorder %s699_s29, %s521_s7  ;;  %p526_p4 = scmp.lt.s32.totalorder %s699_s29, %s741_s3 }
 0x175   : > { %p527_p7 = scmp.lt.s32.totalorder %s525_s10, %s521_s7 }
 0x176   : > { %p523_p2 = pnand %p522_p1, %p638_p5 }
 0x177   : > { %p528_p8 = por %p527_p7, %p526_p4 }
 0x178   : > { %p524_p3 = pneg %p523_p2 }
 0x17a   : > { %p529_p6 = pnand %p528_p8, %p524_p3 }
 0x17c   : > { %532 = shalt.err (!%p529_p6)
}
 0x17d   : > { %429 = dma.vmem_to_hbm [thread:$0]  (%p638_p5), %s694_s25, 128, %s699_s29, %s312_s30  }
 0x17e PF: > { %p441_p9 = scmp.ge.s32.totalorder %s571_s15, 2  ;;  %s337_s19 = sand.u32 1, %s559_s12  }
 0x17f   : > { %p745_p10 = scmp.ne.s32.totalorder %s743_s23, 0  ;;  %s338_s20 = scalar_lea.sflag [#allocation4], %s337_s19 }
 0x181   : > { %p436_p11 = pnand %p441_p9, %p745_p10 }
 0x183   : > { %p437_p12 = pneg %p436_p11 }
 0x185   : > { %554 = dma.done.wait (%p437_p12), %s338_s20, 128  }
 0x186   : > { %556 = vsyncadd (%p437_p12), %s338_s20, 4294967168  ;;  %p14_p13 = scmp.ge.s32.totalorder %s625_s18, 4   ;;  %s746_s12 = smov %s563_s13 }
 0x187   : > { %s747_s13 = smov %s567_s14  ;;  %s748_s14 = smov %s636_s21 }
 0x188   : > { %s749_s15 = smov %s625_s18  ;;  %16 = sbr.rel (!%p14_p13) target bundleno = 4 (0x4), region = 75 }
 0x18d   :  { %343 = vsyncpa [#allocation3], 1 }
 0x18e   :  { %345 = vsyncpa [#allocation3 + $0x1], 1 }
 0x18f   :  { %346 = vsyncpa [#allocation4], 1 }
 0x190   :  { %348 = vsyncpa [#allocation4 + $0x1], 1 }

</bundles_post_ra>
